<compile_context>
chip_gen: v7x
topology: tpu7x:2x2x1
jax: 0.10.0
libtpu: 0.0.40
codegen_flags: <defaults>
</compile_context>

<pallas_src>
import jax
import jax.numpy as jnp
from jax import lax
from jax.experimental import pallas as pl
from jax.experimental.pallas import tpu as pltpu

NEG_SLOPE = 0.2  # GATConv default negative_slope


# ----------------------------- Pallas kernel ---------------------------------
def gat_kernel(x_all_ref, x_tgt_ref, w_ref, asrc_ref, adst_ref, bias_ref,
               adj_ref, out_ref):
    w = w_ref[...]                                                     # [Cin, Cout]

    # Feature transform for ALL source nodes (every target tile needs it) and for this
    # tile's target rows (tiny TM x Cin x Cout recompute, avoids dynamic-slicing h).
    h = jnp.dot(x_all_ref[...], w, preferred_element_type=jnp.float32)    # [N,  Cout]
    h_t = jnp.dot(x_tgt_ref[...], w, preferred_element_type=jnp.float32)  # [TM, Cout]

    # Attention logits: a_src as a [1, N] row via an MXU matvec (gives the row layout
    # directly); a_dst per target row on the VPU (no MXU drain for an M=1 matmul).
    a_src = lax.dot_general(asrc_ref[...], h,
                            dimension_numbers=(((1,), (1,)), ((), ())),
                            preferred_element_type=jnp.float32)           # [1, N]
    a_dst = jnp.sum(h_t * adst_ref[...], axis=-1, keepdims=True)          # [TM, 1]

    e = a_dst + a_src                                                     # [TM, N]
    e = jnp.maximum(e, NEG_SLOPE * e)          # LeakyReLU(0.2): mul+max, no cmp+select

    adj = adj_ref[...]                                                    # [TM, N] bf16
    # Masked softmax without a -1e30 select: the unmasked row max m is >= the masked
    # max, so exp(e - m) cannot overflow, and multiplying by adj zeroes non-edges.
    # The self-loop guarantees denom > 0.
    m = jnp.max(e, axis=-1, keepdims=True)
    p = jnp.exp(e - m) * adj.astype(jnp.float32)
    denom = jnp.sum(p, axis=-1, keepdims=True)
    attn = p * pl.reciprocal(denom, approx=True)       # EUP vrcp, VALU stays free

    # aggr='add': softmax-weighted sum.  bf16 MXU operands, f32 accumulation.
    out = jnp.dot(attn.astype(jnp.bfloat16), h.astype(jnp.bfloat16),
                  preferred_element_type=jnp.float32)                     # [TM, Cout]
    out_ref[...] = (out + bias_ref[...]).astype(out_ref.dtype)


def _choose_tm(n, adj_itemsize, vmem_budget=24 << 20, cap=512):
    """Target-row tile size: double-buffered adj tile (2*tm*n*adj_bytes) plus ~2 live
    [tm, n] f32 intermediates (logits / probs) must fit the VMEM budget."""
    tm = min(cap, n)
    per_row_bytes = n * (2 * adj_itemsize + 2 * 4)
    while tm > 8 and tm * per_row_bytes > vmem_budget:
        tm //= 2
    tm = max(8, (tm // 8) * 8)
    return min(tm, n)


def spherical_cheb_conv_pallas(x, w, att_src, att_dst, bias, adj, *, tm=None):
    N, Cin = x.shape
    Cout = w.shape[1]
    if tm is None:
        tm = _choose_tm(N, jnp.dtype(adj.dtype).itemsize)
    grid = (pl.cdiv(N, tm),)

    def full(shape):
        # whole-array operand, resident in VMEM for every grid step
        return pl.BlockSpec(shape, lambda i: (0,) * len(shape))

    return pl.pallas_call(
        gat_kernel,
        out_shape=jax.ShapeDtypeStruct((N, Cout), jnp.float32),
        grid_spec=pltpu.PrefetchScalarGridSpec(
            num_scalar_prefetch=0,
            grid=grid,
            in_specs=[
                full((N, Cin)),                                # x (all source nodes)
                pl.BlockSpec((tm, Cin), lambda i: (i, 0)),     # x tile (target rows)
                full((Cin, Cout)),                             # W
                full((1, Cout)),                               # att_src
                full((1, Cout)),                               # att_dst
                full((1, Cout)),                               # bias
                pl.BlockSpec((tm, N), lambda i: (i, 0)),       # adj tile (streamed, bf16)
            ],
            out_specs=pl.BlockSpec((tm, Cout), lambda i: (i, 0)),
        ),
        compiler_params=pltpu.CompilerParams(
            dimension_semantics=("parallel",),   # independent target tiles -> 2 TCs on v7x
            vmem_limit_bytes=32 * 1024 * 1024,   # explicit (v5e default is only 16 MiB)
        ),
    )(x, x, w, att_src, att_dst, bias, adj)


# ----------------------------- glue: knn_graph --------------------------------
def build_knn_adjacency(position, k):
    """Dense [N_target, N_source] edge mask matching
    knn_graph(position, k, flow='target_to_source') consumed by GATConv
    (flow='source_to_target', add_self_loops=True).  Returned as bf16 (0/1 exact)."""
    N = position.shape[0]
    d2 = jnp.sum((position[:, None, :] - position[None, :, :]) ** 2, axis=-1)  # [N, N]
    d2 = d2 + jnp.eye(N, dtype=d2.dtype) * 1e9                                 # exclude self
    _, nbr = lax.top_k(-d2, k)                                                 # [N, k]
    kmask = jnp.zeros((N, N), jnp.float32).at[
        jnp.arange(N)[:, None], nbr].set(1.0)                                  # kmask[i, j]: j in knn(i)
    adj = kmask.T                                                              # edge i -> j  =>  adj[target=j, source=i]
    adj = jnp.maximum(adj, jnp.eye(N, dtype=jnp.float32))                      # add_self_loops=True
    return adj.astype(jnp.bfloat16)


# ----------------------------- pure-JAX reference -----------------------------
def gat_reference(x, w, att_src, att_dst, bias, adj):
    h = x @ w
    a_s = jnp.sum(h * att_src, axis=-1)    # [N]
    a_d = jnp.sum(h * att_dst, axis=-1)    # [N]
    e = a_d[:, None] + a_s[None, :]
    e = jnp.where(e >= 0.0, e, NEG_SLOPE * e)
    e = jnp.where(adj > 0, e, -jnp.inf)
    p = jax.nn.softmax(e, axis=-1)
    p = jnp.where(adj > 0, p, 0.0)
    return p @ h + bias


# ----------------------------------- main --------------------------------------
if __name__ == "__main__":
    N, Cin, Cout = 128, 16, 32
    K_NN = 80  # hardcoded in SphericalChebConv.forward

    key = jax.random.PRNGKey(0)
    kx, kp, kw, ka1, ka2 = jax.random.split(key, 5)

    x = jax.random.normal(kx, (N, Cin), dtype=jnp.float32)
    position = jax.random.normal(kp, (N, 3), dtype=jnp.float32)
    position = position / jnp.linalg.norm(position, axis=-1, keepdims=True)  # points on the sphere

    # Deterministic GATConv(heads=1) parameters (glorot-style), no checkpoint load.
    w_scale = jnp.sqrt(6.0 / (Cin + Cout))
    w = jax.random.uniform(kw, (Cin, Cout), jnp.float32, -w_scale, w_scale)
    a_scale = jnp.sqrt(6.0 / (1 + Cout))
    att_src = jax.random.uniform(ka1, (1, Cout), jnp.float32, -a_scale, a_scale)
    att_dst = jax.random.uniform(ka2, (1, Cout), jnp.float32, -a_scale, a_scale)
    bias = jnp.zeros((1, Cout), jnp.float32)

    # TODO(synk): only aggr='add' (standard softmax-weighted sum of GAT) is implemented;
    # other aggr values (mean/max) of the module's ctor arg are not.
    adj = build_knn_adjacency(position, K_NN)

    # tm=32 exercises the 4-step target-row grid at this toy size; at real N the
    # auto-chooser (tm=None) budgets the tile against VMEM.
    out = spherical_cheb_conv_pallas(x, w, att_src, att_dst, bias, adj, tm=32)
    out = jax.block_until_ready(out)

    ref = gat_reference(x, w, att_src, att_dst, bias, adj)
    assert out.shape == (N, Cout)
    assert jnp.all(jnp.isfinite(out))
    # Tolerance accounts for bf16 MXU operands in the aggregation matmul (f32 accumulation)
    # and the approx EUP reciprocal; the f32 reference stays exact.
    assert jnp.allclose(out, ref, atol=3e-2, rtol=3e-2), (
        f"max abs err {jnp.max(jnp.abs(out - ref))}")

    print("KERNEL_OK")
</pallas_src>

<mosaic_0001>
module attributes {stable_mosaic.version = 11 : i64} {
  func.func @gat_kernel(%arg0: i32, %arg1: memref<128x16xf32, #tpu.memory_space<vmem>>, %arg2: memref<32x16xf32, #tpu.memory_space<vmem>>, %arg3: memref<16x32xf32, #tpu.memory_space<vmem>>, %arg4: memref<1x32xf32, #tpu.memory_space<vmem>>, %arg5: memref<1x32xf32, #tpu.memory_space<vmem>>, %arg6: memref<1x32xf32, #tpu.memory_space<vmem>>, %arg7: memref<32x128xbf16, #tpu.memory_space<vmem>>, %arg8: memref<32x32xf32, #tpu.memory_space<vmem>>) attributes {dimension_semantics = [#tpu.dimension_semantics<parallel>], iteration_bounds = array<i64: 4>, scalar_prefetch = 0 : i64, scratch_operands = 0 : i64, tpu.core_type = #tpu.core_type<tc>, window_params = [{pipeline_mode = #tpu.pipeline_mode<synchronous>, transform_indices = @transform_0, window_bounds = array<i64: 128, 16>}, {transform_indices = @transform_1, window_bounds = array<i64: 32, 16>}, {pipeline_mode = #tpu.pipeline_mode<synchronous>, transform_indices = @transform_2, window_bounds = array<i64: 16, 32>}, {pipeline_mode = #tpu.pipeline_mode<synchronous>, transform_indices = @transform_3, window_bounds = array<i64: 1, 32>}, {pipeline_mode = #tpu.pipeline_mode<synchronous>, transform_indices = @transform_4, window_bounds = array<i64: 1, 32>}, {pipeline_mode = #tpu.pipeline_mode<synchronous>, transform_indices = @transform_5, window_bounds = array<i64: 1, 32>}, {transform_indices = @transform_6, window_bounds = array<i64: 32, 128>}, {transform_indices = @transform_7, window_bounds = array<i64: 32, 32>}]} {
    %c0 = arith.constant 0 : index
    %c0_0 = arith.constant 0 : index
    %0 = vector.load %arg3[%c0, %c0_0] : memref<16x32xf32, #tpu.memory_space<vmem>>, vector<16x32xf32>
    %c0_1 = arith.constant 0 : index
    %c0_2 = arith.constant 0 : index
    %1 = vector.load %arg1[%c0_1, %c0_2] : memref<128x16xf32, #tpu.memory_space<vmem>>, vector<128x16xf32>
    %cst = arith.constant dense<0.000000e+00> : vector<128x32xf32>
    %2 = tpu.matmul %1, %0, %cst {dimension_numbers = #tpu.dot_dimension_numbers<[1], [0], [0], [1], [0, 0, 1, 1], [], []>} : vector<128x16xf32>, vector<16x32xf32>, vector<128x32xf32> -> vector<128x32xf32>
    %c0_3 = arith.constant 0 : index
    %c0_4 = arith.constant 0 : index
    %3 = vector.load %arg2[%c0_3, %c0_4] : memref<32x16xf32, #tpu.memory_space<vmem>>, vector<32x16xf32>
    %cst_5 = arith.constant dense<0.000000e+00> : vector<32x32xf32>
    %4 = tpu.matmul %3, %0, %cst_5 {dimension_numbers = #tpu.dot_dimension_numbers<[1], [0], [0], [1], [0, 0, 1, 1], [], []>} : vector<32x16xf32>, vector<16x32xf32>, vector<32x32xf32> -> vector<32x32xf32>
    %c0_6 = arith.constant 0 : index
    %c0_7 = arith.constant 0 : index
    %5 = vector.load %arg4[%c0_6, %c0_7] : memref<1x32xf32, #tpu.memory_space<vmem>>, vector<1x32xf32>
    %cst_8 = arith.constant dense<0.000000e+00> : vector<1x128xf32>
    %6 = tpu.matmul %5, %2, %cst_8 {dimension_numbers = #tpu.dot_dimension_numbers<[1], [1], [0], [0], [0, 0, 1, 0], [], []>} : vector<1x32xf32>, vector<128x32xf32>, vector<1x128xf32> -> vector<1x128xf32>
    %c0_9 = arith.constant 0 : index
    %c0_10 = arith.constant 0 : index
    %7 = vector.load %arg5[%c0_9, %c0_10] : memref<1x32xf32, #tpu.memory_space<vmem>>, vector<1x32xf32>
    %8 = vector.broadcast %7 : vector<1x32xf32> to vector<32x32xf32>
    %9 = arith.mulf %4, %8 : vector<32x32xf32>
    %cst_11 = arith.constant dense<0.000000e+00> : vector<32xf32>
    %10 = vector.multi_reduction <add>, %9, %cst_11 [1] : vector<32x32xf32> to vector<32xf32>
    %11 = vector.shape_cast %10 : vector<32xf32> to vector<32x1xf32>
    %12 = vector.broadcast %11 : vector<32x1xf32> to vector<32x128xf32>
    %13 = vector.broadcast %6 : vector<1x128xf32> to vector<32x128xf32>
    %14 = arith.addf %12, %13 : vector<32x128xf32>
    %cst_12 = arith.constant 2.000000e-01 : f32
    %15 = vector.broadcast %cst_12 : f32 to vector<32x128xf32>
    %16 = arith.mulf %15, %14 : vector<32x128xf32>
    %17 = arith.maximumf %14, %16 : vector<32x128xf32>
    %c0_13 = arith.constant 0 : index
    %c0_14 = arith.constant 0 : index
    %18 = vector.load %arg7[%c0_13, %c0_14] : memref<32x128xbf16, #tpu.memory_space<vmem>>, vector<32x128xbf16>
    %cst_15 = arith.constant dense<0xFF800000> : vector<32xf32>
    %19 = vector.multi_reduction <maximumf>, %17, %cst_15 [1] : vector<32x128xf32> to vector<32xf32>
    %20 = vector.shape_cast %19 : vector<32xf32> to vector<32x1xf32>
    %21 = vector.broadcast %20 : vector<32x1xf32> to vector<32x128xf32>
    %22 = arith.subf %17, %21 : vector<32x128xf32>
    %23 = math.exp %22 : vector<32x128xf32>
    %24 = arith.extf %18 : vector<32x128xbf16> to vector<32x128xf32>
    %25 = arith.mulf %23, %24 : vector<32x128xf32>
    %cst_16 = arith.constant dense<0.000000e+00> : vector<32xf32>
    %26 = vector.multi_reduction <add>, %25, %cst_16 [1] : vector<32x128xf32> to vector<32xf32>
    %27 = vector.shape_cast %26 : vector<32xf32> to vector<32x1xf32>
    %28 = tpu.reciprocal %27 {approx = true} : vector<32x1xf32> -> vector<32x1xf32>
    %29 = vector.broadcast %28 : vector<32x1xf32> to vector<32x128xf32>
    %30 = arith.mulf %25, %29 : vector<32x128xf32>
    %31 = arith.truncf %30 : vector<32x128xf32> to vector<32x128xbf16>
    %32 = arith.truncf %2 : vector<128x32xf32> to vector<128x32xbf16>
    %cst_17 = arith.constant dense<0.000000e+00> : vector<32x32xf32>
    %33 = tpu.matmul %31, %32, %cst_17 {dimension_numbers = #tpu.dot_dimension_numbers<[1], [0], [0], [1], [0, 0, 1, 1], [], []>} : vector<32x128xbf16>, vector<128x32xbf16>, vector<32x32xf32> -> vector<32x32xf32>
    %c0_18 = arith.constant 0 : index
    %c0_19 = arith.constant 0 : index
    %34 = vector.load %arg6[%c0_18, %c0_19] : memref<1x32xf32, #tpu.memory_space<vmem>>, vector<1x32xf32>
    %35 = vector.broadcast %34 : vector<1x32xf32> to vector<32x32xf32>
    %36 = arith.addf %33, %35 : vector<32x32xf32>
    %c0_20 = arith.constant 0 : index
    %c0_21 = arith.constant 0 : index
    %37 = vector.load %arg8[%c0_20, %c0_21] : memref<32x32xf32, #tpu.memory_space<vmem>>, vector<32x32xf32>
    tpu.vector_store %arg8[%c0_20, %c0_21], %36 {strides = array<i32>} : memref<32x32xf32, #tpu.memory_space<vmem>>, vector<32x32xf32>,
    return
  }
  func.func @transform_0(%arg0: i32) -> (i32, i32) {
    %c0_i32 = arith.constant 0 : i32
    %c0_i32_0 = arith.constant 0 : i32
    %c0_i32_1 = arith.constant 0 : i32
    return %c0_i32, %c0_i32_0 : i32, i32
  }
  func.func @transform_1(%arg0: i32) -> (i32, i32) {
    %c0_i32 = arith.constant 0 : i32
    %c0_i32_0 = arith.constant 0 : i32
    return %arg0, %c0_i32 : i32, i32
  }
  func.func @transform_2(%arg0: i32) -> (i32, i32) {
    %c0_i32 = arith.constant 0 : i32
    %c0_i32_0 = arith.constant 0 : i32
    %c0_i32_1 = arith.constant 0 : i32
    return %c0_i32, %c0_i32_0 : i32, i32
  }
  func.func @transform_3(%arg0: i32) -> (i32, i32) {
    %c0_i32 = arith.constant 0 : i32
    %c0_i32_0 = arith.constant 0 : i32
    %c0_i32_1 = arith.constant 0 : i32
    return %c0_i32, %c0_i32_0 : i32, i32
  }
  func.func @transform_4(%arg0: i32) -> (i32, i32) {
    %c0_i32 = arith.constant 0 : i32
    %c0_i32_0 = arith.constant 0 : i32
    %c0_i32_1 = arith.constant 0 : i32
    return %c0_i32, %c0_i32_0 : i32, i32
  }
  func.func @transform_5(%arg0: i32) -> (i32, i32) {
    %c0_i32 = arith.constant 0 : i32
    %c0_i32_0 = arith.constant 0 : i32
    %c0_i32_1 = arith.constant 0 : i32
    return %c0_i32, %c0_i32_0 : i32, i32
  }
  func.func @transform_6(%arg0: i32) -> (i32, i32) {
    %c0_i32 = arith.constant 0 : i32
    %c0_i32_0 = arith.constant 0 : i32
    return %arg0, %c0_i32 : i32, i32
  }
  func.func @transform_7(%arg0: i32) -> (i32, i32) {
    %c0_i32 = arith.constant 0 : i32
    %c0_i32_0 = arith.constant 0 : i32
    return %arg0, %c0_i32 : i32, i32
  }
}

</mosaic_0001>

<bundles_post_ra>
// kernel: tpu_custom_call.1
= control target key start
LH: loop header
LB: loop body
LE: loop exit
PB: predicated region body
PF: predicated region fallthrough
CT: control target
= control target key end

     0   :  { %s1289_s24 = smov 0   ;;  %s1439_s0 = inlined_call_operand.vmem [shape: f32[128,16], index: 0, kind: input, shape index: {}]   ;;  %s1440_s1 = inlined_call_operand.vmem [shape: f32[128,16], index: 1, kind: input, shape index: {}]   ;;  %s1441_s2 = inlined_call_operand.vmem [shape: f32[16,32], index: 2, kind: input, shape index: {}]   ;;  %s1442_s3 = inlined_call_operand.vmem [shape: f32[1,32], index: 3, kind: input, shape index: {}]   ;;  %s1443_s4 = inlined_call_operand.vmem [shape: f32[1,32], index: 4, kind: input, shape index: {}]   ;;  %s1444_s5 = inlined_call_operand.vmem [shape: f32[1,32], index: 5, kind: input, shape index: {}]   ;;  %s1445_s6 = inlined_call_operand.vmem [shape: bf16[128,128], index: 6, kind: input, shape index: {}]   ;;  %s1446_s7 = inlined_call_operand.vmem [shape: f32[128,32], index: 7, kind: output, shape index: {}]  }
   0x1 LB: > { %s966_s25 = sadd.s32 4294967295, %s1244_s24   ;;  %p970_p0 = scmp.ge.s32.totalorder %s1244_s24, 1  ;;  %s1244_s24 = sphi %s1289_s24, %s17_s24  }
   0x2   : > { %p249_p1 = scmp.lt.s32.totalorder %s1244_s24, 5 }
   0x4   : > { %p250_p2 = pnand %p970_p0, %p249_p1 }
   0x5   : > { %v305_v0 = vld [vmem:[%s1441_s2] sm:$0xff] (!%p250_p2)  ;;  %v306_v1 = vld [vmem:[%s1441_s2 + $0x8] sm:$0xff] (!%p250_p2)  ;;  %vm323_vm0 = vcmask (!%p250_p2), 130048   ;;  %s971_s9 = sshll.u32 (!%p250_p2), %s966_s25, 2  ;;  %v309_v5 = vld [vmem:[%s1439_s0 + $0x10] sm:$0xff] (!%p250_p2)  ;;  %v1246_v23 = vmov (!%p250_p2), 0.0|0.0  }
   0x6   : > { %253 = sbr.rel (%p250_p2) target bundleno = 1049 (0x419), region = 48  ;;  %v307_v2 = vld [vmem:[%s1439_s0] sm:$0xff] (!%p250_p2)  ;;  %v1171_v3 = vpack.c.bf16 (!%p250_p2), %v306_v1, %v305_v0  ;;  %p287_p3 = scmp.lt.s32.totalorder (!%p250_p2), %s971_s9, 15  ;;  %v308_v4 = vld [vmem:[%s1439_s0 + $0x8] sm:$0xff] (!%p250_p2)  ;;  %v310_v9 = vld [vmem:[%s1439_s0 + $0x18] sm:$0xff] (!%p250_p2)  ;;  %vm1247_vm1 = vmmov (!%p250_p2), 0   ;;  %v764_v0 = vlaneseq (!%p250_p2) }
   0x7   : > { %1082 = vmatprep.mubr.msk.f32.mxu0 (!%p250_p2), %vm323_vm0, %v307_v2  ;;  %v311_v10 = vld [vmem:[%s1439_s0 + $0x20] sm:$0xff] (!%p250_p2)  ;;  %v312_v12 = vld [vmem:[%s1439_s0 + $0x28] sm:$0xff] (!%p250_p2)  ;;  %v313_v13 = vld [vmem:[%s1439_s0 + $0x30] sm:$0xff] (!%p250_p2)  ;;  %v1248_v24 = vmov (!%p250_p2), 0.0   ;;  %vm619_vm2 = vcmask (!%p250_p2), 261120  }
   0x8   : > { %1172 = vmatprep.subr.bf16.mxu0 (!%p250_p2), %v1171_v3  ;;  %1176 = vmatprep.subr.bf16.mxu1 (!%p250_p2), %v1171_v3  ;;  %v314_v14 = vld [vmem:[%s1439_s0 + $0x38] sm:$0xff] (!%p250_p2)  ;;  %v315_v15 = vld [vmem:[%s1439_s0 + $0x40] sm:$0xff] (!%p250_p2)  ;;  %v316_v16 = vld [vmem:[%s1439_s0 + $0x48] sm:$0xff] (!%p250_p2)  ;;  %v765_v1 = vshrl.u32 (!%p250_p2), %v764_v0, 7 }
   0x9   : > { %1174 = vmatpush3.bf16.msra.mxu0 (!%p250_p2), %v1171_v3  ;;  %1178 = vmatpush3.bf16.msra.mxu1 (!%p250_p2), %v1171_v3  ;;  %v317_v17 = vld [vmem:[%s1439_s0 + $0x50] sm:$0xff] (!%p250_p2)  ;;  %v318_v18 = vld [vmem:[%s1439_s0 + $0x58] sm:$0xff] (!%p250_p2)  ;;  %v319_v19 = vld [vmem:[%s1439_s0 + $0x60] sm:$0xff] (!%p250_p2) }
   0xa   : > { %v320_v20 = vld [vmem:[%s1439_s0 + $0x68] sm:$0xff] (!%p250_p2)  ;;  %v321_v21 = vld [vmem:[%s1439_s0 + $0x70] sm:$0xff] (!%p250_p2)  ;;  %v322_v22 = vld [vmem:[%s1439_s0 + $0x78] sm:$0xff] (!%p250_p2)  ;;  %1179 = vmatprep.subr.bf16.mxu0 (!%p250_p2), %v1246_v23 }
   0xb   : > { %vm1382_vm3 = vmpackc.low (!%p250_p2), %vm619_vm2, %vm619_vm2  ;;  %v1014_v28 = vld [vmem:[%s1443_s4] ss:$0 sm:$0xff] (!%p250_p2) }
   0xc   : > { %1083 = vmatmul.mubr.msk.f32.vlgmr.msra.gmra.mrb[0].mxu0 (!%p250_p2), %vm323_vm0, %v308_v4  ;;  %v618_v63 = vld [vmem:[%s1442_s3] sm:$0x1] (!%p250_p2)  ;;  %v766_v4 = vsub.s32 (!%p250_p2), 0, %v765_v1 }
   0xd   : > { %s1450_s9 = smov (!%p287_p3, %s971_s9), 15  ;;  %1085 = vmatprep.mubr.msk.f32.mxu0 %vm323_vm0, %v309_v5 }
   0xe   : > { %s972_s14 = sshll.u32 %s1450_s9, 3  ;;  %s974_s29 = sshll.u32 %s1450_s9, 2 }
   0xf   : > { %s290_s17 = scalar_lea.vmem %s1440_s1, %s972_s14  ;;  %s296_s10 = scalar_lea.vmem %s1445_s6, %s974_s29 }
  0x10   : > { %v517_v6 = vld [vmem:[%s290_s17] sm:$0xff]  ;;  %v518_v7 = vld [vmem:[%s290_s17 + $0x8] sm:$0xff]  ;;  %v519_v8 = vld [vmem:[%s290_s17 + $0x10] sm:$0xff]  ;;  %1086 = vmatmul.mubr.msk.f32.gmra.mrb[2].mxu0 %vm323_vm0, %v310_v9  ;;  %s302_s16 = scalar_lea.vmem %s1446_s7, %s972_s14 }
  0x11   : > { %1110 = vmatprep.mubr.msk.f32.mxu1 %vm323_vm0, %v517_v6  ;;  %v520_v11 = vld [vmem:[%s290_s17 + $0x18] sm:$0xff]  ;;  %1088 = vmatprep.mubr.msk.f32.mxu0 %vm323_vm0, %v311_v10 }
  0x12   : > { %1111 = vmatmul.mubr.msk.f32.vlgmr.msra.gmra.mrb[0].mxu1 %vm323_vm0, %v518_v7 }
  0x13   : > { %1113 = vmatprep.mubr.msk.f32.mxu1 %vm323_vm0, %v519_v8 }
  0x14   : > { %1089 = vmatmul.mubr.msk.f32.gmra.mrb[4].mxu0 %vm323_vm0, %v312_v12 }
  0x15   : > { %1091 = vmatprep.mubr.msk.f32.mxu0 %vm323_vm0, %v313_v13 }
  0x16   : > { %1114 = vmatmul.mubr.msk.f32.gmra.mrb[2].mxu1 %vm323_vm0, %v520_v11 }
  0x18   : > { %1092 = vmatmul.mubr.msk.f32.gmra.mrb[6].mxu0 %vm323_vm0, %v314_v14 }
  0x19   : > { %1094 = vmatprep.mubr.msk.f32.mxu0 %vm323_vm0, %v315_v15 }
  0x1c   : > { %1095 = vmatmul.mubr.msk.f32.gmra.mrb[8].mxu0 %vm323_vm0, %v316_v16 }
  0x1d   : > { %1097 = vmatprep.mubr.msk.f32.mxu0 %vm323_vm0, %v317_v17 }
  0x20   : > { %1098 = vmatmul.mubr.msk.f32.gmra.mrb[10].mxu0 %vm323_vm0, %v318_v18 }
  0x21   : > { %1100 = vmatprep.mubr.msk.f32.mxu0 %vm323_vm0, %v319_v19 }
  0x24   : > { %1101 = vmatmul.mubr.msk.f32.gmra.mrb[12].mxu0 %vm323_vm0, %v320_v20 }
  0x25   : > { %1103 = vmatprep.mubr.msk.f32.mxu0 %vm323_vm0, %v321_v21 }
  0x28   : > { %1104 = vmatmul.mubr.msk.f32.gmra.mrb[14].mxu0 %vm323_vm0, %v322_v22 }
  0x29   : > { %1148 = vmatprep.mubr.msk.f32.mxu0 %vm1247_vm1, %v1248_v24 }
  0xdf   : > { %v1084_v25 = vpop.f32.mrb[0].mxu0 }
  0xe0   : > { %v438_v26 = vpop.f32.mrb[1].mxu0 }
  0xe1   : > { %v1180_v29 = vpack.c.bf16 %v1084_v25, %v438_v26 }
  0xe3   : > { %1182 = vmatpush3.bf16.xpose.msk.msra.mxu0 %vm1382_vm3, %v1180_v29  ;;  %1151 = vmatprep.subr.bf16.mxu1 %v1180_v29  ;;  %v1087_v32 = vpop.f32.mrb[2].mxu0 }
  0xe4   : > { %1152 = vmatpush3.bf16.msra.mxu1 %v1180_v29  ;;  %v448_v35 = vpop.f32.mrb[3].mxu0  ;;  %1183 = vmatprep.subr.bf16.mxu0 %v1246_v23 }
  0xe5   : > { %v1112_v30 = vpop.f32.mrb[0].mxu1  ;;  %v1184_v36 = vpack.c.bf16 %v1087_v32, %v448_v35 }
  0xe6   : > { %v599_v31 = vpop.f32.mrb[1].mxu1  ;;  %v749_v33 = vmul.f32 %v1112_v30, %v1014_v28 }
  0xe7   : > { %v748_v34 = vmul.f32 %v1014_v28, %v599_v31  ;;  %1153 = vmatprep.subr.bf16.mxu1 %v1184_v36  ;;  %v1090_v40 = vpop.f32.mrb[4].mxu0 }
  0xe8   : > { %v755_v43 = vsel %vm619_vm2, %v749_v33, 0.0  ;;  %1154 = vmatpush3.bf16.msra.mxu1 %v1184_v36  ;;  %v458_v44 = vpop.f32.mrb[5].mxu0 }
  0xe9   : > { %v1115_v37 = vpop.f32.mrb[2].mxu1  ;;  %v752_v38 = vsel %vm619_vm2, %v748_v34, 0.0  ;;  %v1188_v45 = vpack.c.bf16 %v1090_v40, %v458_v44  ;;  %v1019_v34 = vld [vmem:[%s296_s10] sm:$0xff]  }
  0xea   : > { %753 = vadd.xlane.f32.xlu0 %v752_v38  ;;  %v609_v39 = vpop.f32.mrb[3].mxu1  ;;  %v751_v41 = vmul.f32 %v1115_v37, %v1014_v28  ;;  %v1020_v35 = vunpack.c.l.bf16 %v1019_v34  ;;  %v1026_v37 = vld [vmem:[%s296_s10 + $0x8] sm:$0xff]  }
  0xeb   : > { %v750_v42 = vmul.f32 %v1014_v28, %v609_v39  ;;  %1186 = vmatpush3.bf16.xpose.msk.msra.mxu0 %vm1382_vm3, %v1184_v36  ;;  %1155 = vmatprep.subr.bf16.mxu1 %v1188_v45  ;;  %v1093_v47 = vpop.f32.mrb[6].mxu0  ;;  %v1021_v36 = vunpack.c.h.bf16 %v1019_v34 }
  0xec   : > { %v761_v48 = vsel %vm619_vm2, %v751_v41, 0.0  ;;  %1187 = vmatprep.subr.bf16.mxu0 %v1246_v23  ;;  %1156 = vmatpush3.bf16.msra.mxu1 %v1188_v45  ;;  %v468_v49 = vpop.f32.mrb[7].mxu0  ;;  %v1024_v41 = vunpack.c.l.bf16 %v1026_v37 }
  0xed   : > { %v758_v46 = vsel %vm619_vm2, %v750_v42, 0.0  ;;  %v1192_v50 = vpack.c.bf16 %v1093_v47, %v468_v49 }
  0xee   : > { %756 = vadd.xlane.f32.xlu0 %v755_v43  ;;  %759 = vadd.xlane.f32.xlu1 %v758_v46  ;;  %v1025_v43 = vunpack.c.h.bf16 %v1026_v37 }
  0xef   : > { %1157 = vmatprep.subr.bf16.mxu1 %v1192_v50  ;;  %v1096_v51 = vpop.f32.mrb[8].mxu0 }
  0xf0   : > { %1158 = vmatpush3.bf16.msra.mxu1 %v1192_v50  ;;  %v478_v52 = vpop.f32.mrb[9].mxu0 }
  0xf1   : > { %v1196_v53 = vpack.c.bf16 %v1096_v51, %v478_v52 }
  0xf2   : > { %762 = vadd.xlane.f32.xlu1 %v761_v48 }
  0xf3   : > { %1190 = vmatpush3.bf16.xpose.msk.msra.mxu0 %vm1382_vm3, %v1188_v45  ;;  %1159 = vmatprep.subr.bf16.mxu1 %v1196_v53  ;;  %v1099_v54 = vpop.f32.mrb[10].mxu0 }
  0xf4   : > { %1191 = vmatprep.subr.bf16.mxu0 %v1246_v23  ;;  %1160 = vmatpush3.bf16.msra.mxu1 %v1196_v53  ;;  %v488_v55 = vpop.f32.mrb[11].mxu0 }
  0xf5   : > { %v1200_v56 = vpack.c.bf16 %v1099_v54, %v488_v55 }
  0xf7   : > { %1161 = vmatprep.subr.bf16.mxu1 %v1200_v56  ;;  %v1102_v57 = vpop.f32.mrb[12].mxu0 }
  0xf8   : > { %1162 = vmatpush3.bf16.msra.mxu1 %v1200_v56  ;;  %v498_v58 = vpop.f32.mrb[13].mxu0 }
  0xf9   : > { %v1204_v59 = vpack.c.bf16 %v1102_v57, %v498_v58 }
  0xfb   : > { %1194 = vmatpush3.bf16.xpose.msk.msra.mxu0 %vm1382_vm3, %v1192_v50  ;;  %1163 = vmatprep.subr.bf16.mxu1 %v1204_v59  ;;  %v1105_v60 = vpop.f32.mrb[14].mxu0 }
  0xfc   : > { %1195 = vmatprep.subr.bf16.mxu0 %v1246_v23  ;;  %1164 = vmatpush3.bf16.msra.mxu1 %v1204_v59  ;;  %v508_v61 = vpop.f32.mrb[15].mxu0 }
  0xfd   : > { %v1208_v62 = vpack.c.bf16 %v1105_v60, %v508_v61 }
  0xff   : > { %1165 = vmatprep.subr.bf16.mxu1 %v1208_v62 }
 0x100   : > { %1166 = vmatpush3.bf16.msra.mxu1 %v1208_v62 }
 0x103   : > { %1198 = vmatpush3.bf16.xpose.msk.msra.mxu0 %vm1382_vm3, %v1196_v53 }
 0x104   : > { %1199 = vmatprep.subr.bf16.mxu0 %v1246_v23 }
 0x10b   : > { %1202 = vmatpush3.bf16.xpose.msk.msra.mxu0 %vm1382_vm3, %v1200_v56 }
 0x10c   : > { %1203 = vmatprep.subr.bf16.mxu0 %v1246_v23 }
 0x113   : > { %1206 = vmatpush3.bf16.xpose.msk.msra.mxu0 %vm1382_vm3, %v1204_v59 }
 0x114   : > { %1207 = vmatprep.subr.bf16.mxu0 %v1246_v23 }
 0x11b   : > { %1210 = vmatpush3.bf16.xpose.msk.msra.mxu0 %vm1382_vm3, %v1208_v62  ;;  %v1015_v62 = vld [vmem:[%s1444_s5] ss:$0 sm:$0xff] }
 0x122   : > { %1149 = vmatmul.mubr.msk.f32.vlgmr.msra.gmra.mrb[16].mxu0 %vm619_vm2, %v618_v63 }
 0x177   : > { %v754_v3 = vpop.xlane.xlu0 %753 }
 0x17b   : > { %v760_v2 = vpop.xlane.xlu1 %759  ;;  %v757_v9 = vpop.xlane.xlu0 %756 }
 0x17f   : > { %v763_v6 = vpop.xlane.xlu1 %762 }
 0x1f5   : > { %v737_v5 = vpop.f32.mrb[16].mxu0 }
 0x1f6   : > { %v767_v7 = vrot.slane %v737_v5, %v766_v4  ;;  %v1150_v8 = vpop.f32.mrb[17].mxu0 }
 0x1f8   : > { %v771_v10 = vadd.f32 %v767_v7, %v763_v6  ;;  %v768_v11 = vadd.f32 %v767_v7, %v754_v3  ;;  %v769_v12 = vadd.f32 %v767_v7, %v757_v9  ;;  %v770_v13 = vadd.f32 %v767_v7, %v760_v2 }
 0x1fa   : > { %v772_v14 = vmul.f32 0.2, %v768_v11  ;;  %v773_v15 = vmul.f32 0.2, %v769_v12  ;;  %v775_v16 = vmul.f32 0.2, %v771_v10 }
 0x1fb   : > { %v774_v19 = vmul.f32 0.2, %v770_v13 }
 0x1fc   : > { %v776_v17 = vmax.f32 %v768_v11, %v772_v14  ;;  %v777_v18 = vmax.f32 %v769_v12, %v773_v15  ;;  %v779_v21 = vmax.f32 %v771_v10, %v775_v16 }
 0x1fd   : > { %v778_v20 = vmax.f32 %v770_v13, %v774_v19 }
 0x1fe   : > { %784 = vmax.xlane.f32.xlu0 %v776_v17  ;;  %786 = vmax.xlane.f32.xlu1 %v777_v18 }
 0x202   : > { %788 = vmax.xlane.f32.xlu0 %v778_v20  ;;  %790 = vmax.xlane.f32.xlu1 %v779_v21 }
 0x28b   : > { %v785_v22 = vpop.xlane.xlu0 %784  ;;  %v787_v23 = vpop.xlane.xlu1 %786 }
 0x28c   : > { %v792_v24 = vsub.f32 %v776_v17, %v785_v22  ;;  %v793_v25 = vsub.f32 %v777_v18, %v787_v23 }
 0x28e   : > { %v796_v26 = vmul.f32 1.442695, %v792_v24  ;;  %v798_v27 = vmul.f32 1.442695, %v793_v25 }
 0x28f   : > { %v789_v28 = vpop.xlane.xlu0 %788  ;;  %v791_v29 = vpop.xlane.xlu1 %790 }
 0x290   : > { %1222 = vpow2.f32 %v796_v26  ;;  %v794_v30 = vsub.f32 %v778_v20, %v789_v28  ;;  %v795_v31 = vsub.f32 %v779_v21, %v791_v29 }
 0x291   : > { %1224 = vpow2.f32 %v798_v27 }
 0x292   : > { %v800_v32 = vmul.f32 1.442695, %v794_v30  ;;  %v802_v33 = vmul.f32 1.442695, %v795_v31 }
 0x294   : > { %1226 = vpow2.f32 %v800_v32 }
 0x295   : > { %1228 = vpow2.f32 %v802_v33 }
 0x29a   : > { %v1223_v38 = vpop.eup %1222 }
 0x29b   : > { %v1225_v39 = vpop.eup %1224  ;;  %v808_v40 = vmul.f32 %v1223_v38, %v1020_v35 }
 0x29c   : > { %v809_v42 = vmul.f32 %v1225_v39, %v1021_v36 }
 0x29d   : > { %812 = vadd.xlane.f32.xlu0 %v808_v40 }
 0x29e   : > { %v1227_v44 = vpop.eup %1226  ;;  %814 = vadd.xlane.f32.xlu1 %v809_v42 }
 0x29f   : > { %v1229_v45 = vpop.eup %1228  ;;  %v810_v46 = vmul.f32 %v1227_v44, %v1024_v41 }
 0x2a0   : > { %v811_v47 = vmul.f32 %v1229_v45, %v1025_v43 }
 0x2a1   : > { %816 = vadd.xlane.f32.xlu0 %v810_v46 }
 0x2a2   : > { %818 = vadd.xlane.f32.xlu1 %v811_v47 }
 0x32a   : > { %v813_v48 = vpop.xlane.xlu0 %812 }
 0x32b   : > { %1230 = vrcp.f32 %v813_v48  ;;  %v815_v49 = vpop.xlane.xlu1 %814 }
 0x32c   : > { %1232 = vrcp.f32 %v815_v49 }
 0x32e   : > { %v817_v50 = vpop.xlane.xlu0 %816 }
 0x32f   : > { %1234 = vrcp.f32 %v817_v50  ;;  %v819_v51 = vpop.xlane.xlu1 %818 }
 0x330   : > { %1236 = vrcp.f32 %v819_v51 }
 0x335   : > { %v1231_v52 = vpop.eup %1230 }
 0x336   : > { %v1233_v53 = vpop.eup %1232  ;;  %v824_v54 = vmul.f32 %v1231_v52, %v808_v40 }
 0x337   : > { %v825_v55 = vmul.f32 %v1233_v53, %v809_v42 }
 0x339   : > { %v1235_v56 = vpop.eup %1234  ;;  %v828_v57 = vpack.c.bf16 %v825_v55, %v824_v54 }
 0x33a   : > { %v1237_v58 = vpop.eup %1236  ;;  %v826_v59 = vmul.f32 %v1235_v56, %v810_v46 }
 0x33b   : > { %v827_v60 = vmul.f32 %v1237_v58, %v811_v47  ;;  %1167 = vmatprep.mubr.bf16.mxu1 %v828_v57 }
 0x33d   : > { %v829_v61 = vpack.c.bf16 %v827_v60, %v826_v59 }
 0x33f   : > { %1168 = vmatmul.mubr.bf16.vlgmr.msra.gmra.mrb[4].mxu1 %v829_v61 }
 0x412   : > { %v1169_v63 = vpop.f32.mrb[4].mxu1 }
 0x413   : > { %v888_v0 = vadd.f32 %v1169_v63, %v1015_v62  ;;  %v879_v1 = vpop.f32.mrb[5].mxu1 }
 0x414   : > { %v880_v2 = vadd.f32 %v1015_v62, %v879_v1  ;;  %v1170_v3 = vpop.f32.mrb[6].mxu1 }
 0x415   : > { %896 = vst.msk [vmem:[%s302_s16 + $0x10] sm:$0xff] %vm619_vm2, %v888_v0  ;;  %v891_v4 = vadd.f32 %v1170_v3, %v1015_v62  ;;  %v882_v5 = vpop.f32.mrb[7].mxu1 }
 0x416   : > { %894 = vst.msk [vmem:[%s302_s16] sm:$0xff] %vm619_vm2, %v880_v2  ;;  %v883_v6 = vadd.f32 %v1015_v62, %v882_v5 }
 0x417   : > { %897 = vst.msk [vmem:[%s302_s16 + $0x18] sm:$0xff] %vm619_vm2, %v891_v4 }
 0x418   : > { %895 = vst.msk [vmem:[%s302_s16 + $0x8] sm:$0xff] %vm619_vm2, %v883_v6 }
 0x419 PF: > { %s17_s24 = sadd.s32 1, %s1244_s24  }
 0x41a   : > { %p14_p4 = scmp.ge.s32.totalorder %s17_s24, 6  }
 0x41c   :  { %16 = sbr.rel (!%p14_p4) target bundleno = 1 (0x1), region = 81 }

</bundles_post_ra>
